<compile_context>
chip_gen: v6e
topology: v6e:2x2x1
jax: 0.10.0
libtpu: 0.0.40
codegen_flags: <defaults>
</compile_context>

<pallas_src>
import functools

import jax
import jax.numpy as jnp
from jax.experimental import pallas as pl
from jax.experimental.pallas import tpu as pltpu


# ----------------------------------------------------------------------------
# Hardware-aware tiling helpers
# ----------------------------------------------------------------------------
def _round_up(x, m):
    return ((x + m - 1) // m) * m


@functools.lru_cache(maxsize=None)
def _hw_info():
    """(vmem_capacity_bytes, tensorcores_per_chip) with conservative fallbacks."""
    vmem_cap = 64 * 2**20          # conservative default (v7x has 64 MiB per TC)
    num_tc = 1
    try:
        info = pltpu.get_tpu_info()
        vmem_cap = int(getattr(info, "vmem_capacity_bytes", vmem_cap))
        for attr in ("num_tensorcores", "tensorcores_per_chip", "num_cores"):
            val = getattr(info, attr, None)
            if val:
                num_tc = int(val)
                break
    except Exception:
        pass
    if num_tc == 1:
        try:
            kind = jax.devices()[0].device_kind.lower()
            # v7x and the v4 / v5p "megacore" parts expose 2 TensorCores per chip.
            if ("7" in kind) or ("v4" in kind) or ("v5p" in kind) or ("v5 p" in kind):
                num_tc = 2
        except Exception:
            pass
    return vmem_cap, num_tc


def _choose_tb(rows, feat, *, tb_cap=1024):
    """Batch-tile size: as large as the VMEM budget allows (multiple of 8);
    balanced across TensorCores only when the chip actually has more than one."""
    vmem_cap, num_tc = _hw_info()
    # Double-buffered per-step working set: 6 inputs + 2 wide outputs + score, f32.
    budget = min(int(vmem_cap * 0.6), 48 * 2**20)
    row_bytes = 2 * (8 * feat + 1) * 4
    tb = budget // max(row_bytes, 1)
    tb = max(8, min(tb, tb_cap, _round_up(rows, 8)))
    tb = (tb // 8) * 8
    if num_tc > 1 and rows > 8 * num_tc:
        # Multi-TensorCore: round the step count up to a multiple of the core
        # count so dimension_semantics=("parallel",) balances the work evenly.
        steps = _round_up(max(pl.cdiv(rows, tb), num_tc), num_tc)
        tb = max(8, _round_up(pl.cdiv(rows, steps), 8))
    return tb


def _vmem_limit(need_bytes):
    vmem_cap, _ = _hw_info()
    limit = max(need_bytes + (4 << 20), 16 << 20)
    limit = min(limit, int(vmem_cap * 0.9))
    limit = max(limit, need_bytes + (2 << 20))   # never clamp below the actual need
    return int(limit)


# ----------------------------------------------------------------------------
# Shared in-kernel math: TransD same-size projection + translational score
# ----------------------------------------------------------------------------
def _project_and_score(h, t, r, h_xf, t_xf, r_xf, l1_flag):
    h_dot = jnp.sum(h * h_xf, axis=1, keepdims=True)     # (tb, 1)  VPU mul + XLU reduce
    t_dot = jnp.sum(t * t_xf, axis=1, keepdims=True)
    h_e = h + h_dot * r_xf                                # (tb, E)
    t_e = t + t_dot * r_xf
    diff = h_e + r - t_e
    if l1_flag:
        s = jnp.sum(jnp.abs(diff), axis=1, keepdims=True)
    else:
        s = jnp.sum(diff * diff, axis=1, keepdims=True)
    return s, h_e, t_e


# ----------------------------------------------------------------------------
# Dense path: inputs already gathered by XLA (E < 512)
# ----------------------------------------------------------------------------
def transd_dense_kernel(h_ref, t_ref, r_ref, hxf_ref, txf_ref, rxf_ref,
                        score_ref, hout_ref, tout_ref, *, l1_flag):
    s, h_e, t_e = _project_and_score(
        h_ref[...], t_ref[...], r_ref[...],
        hxf_ref[...], txf_ref[...], rxf_ref[...], l1_flag)
    score_ref[...] = s.astype(score_ref.dtype)
    hout_ref[...] = h_e.astype(hout_ref.dtype)
    tout_ref[...] = t_e.astype(tout_ref.dtype)


def transd_project_and_score(h_e, t_e, r_e, h_xf, t_xf, r_xf, *, l1_flag):
    """All inputs (rows, E) float32 (already gathered).
    Returns (score (rows,), h_proj (rows, E), t_proj (rows, E))."""
    rows, feat = h_e.shape
    tb = _choose_tb(rows, feat)
    num_steps = pl.cdiv(rows, tb)

    # Full-feature blocks: legal even when feat % 128 != 0 (block == full dim),
    # so no feature padding; ragged last row-tile is handled by partial blocks.
    wide_spec = pl.BlockSpec((tb, feat), lambda i: (i, 0))
    vmem_need = 2 * (8 * tb * feat + tb) * 4

    kernel = functools.partial(transd_dense_kernel, l1_flag=l1_flag)
    score, h_out, t_out = pl.pallas_call(
        kernel,
        out_shape=(
            jax.ShapeDtypeStruct((rows, 1), jnp.float32),
            jax.ShapeDtypeStruct((rows, feat), jnp.float32),
            jax.ShapeDtypeStruct((rows, feat), jnp.float32),
        ),
        grid=(num_steps,),
        in_specs=[wide_spec] * 6,
        out_specs=(
            pl.BlockSpec((tb, 1), lambda i: (i, 0)),
            wide_spec,
            wide_spec,
        ),
        compiler_params=pltpu.CompilerParams(
            dimension_semantics=("parallel",),
            vmem_limit_bytes=_vmem_limit(vmem_need),
        ),
    )(h_e, t_e, r_e, h_xf, t_xf, r_xf)
    return score[:, 0], h_out, t_out


# ----------------------------------------------------------------------------
# Gather-fused path: ids scalar-prefetched, tables stay in HBM (E >= 512)
# ----------------------------------------------------------------------------
def transd_gather_kernel(h_ids_ref, t_ids_ref, r_ids_ref,                 # SMEM prefetch
                         ent_w_ref, rel_w_ref, ent_xf_ref, rel_xf_ref,    # HBM (pl.ANY)
                         score_ref, hout_ref, tout_ref,                   # VMEM outputs
                         h_buf, t_buf, r_buf, hxf_buf, txf_buf, rxf_buf,  # VMEM slabs
                         sems, *, tb, l1_flag):
    base = pl.program_id(0) * tb

    def row_copies(row):
        idx = base + row
        hid = h_ids_ref[idx]
        tid = t_ids_ref[idx]
        rid = r_ids_ref[idx]
        return (
            pltpu.make_async_copy(ent_w_ref.at[hid],  h_buf.at[row],   sems.at[0]),
            pltpu.make_async_copy(ent_w_ref.at[tid],  t_buf.at[row],   sems.at[1]),
            pltpu.make_async_copy(rel_w_ref.at[rid],  r_buf.at[row],   sems.at[2]),
            pltpu.make_async_copy(ent_xf_ref.at[hid], hxf_buf.at[row], sems.at[3]),
            pltpu.make_async_copy(ent_xf_ref.at[tid], txf_buf.at[row], sems.at[4]),
            pltpu.make_async_copy(rel_xf_ref.at[rid], rxf_buf.at[row], sems.at[5]),
        )

    # Issue all row gathers for this tile first so they overlap in the DMA engine ...
    @pl.loop(0, tb)
    def _(row):
        for cp in row_copies(row):
            cp.start()

    # ... then wait for them (wait descriptors rebuilt 1:1 with the started copies).
    @pl.loop(0, tb)
    def _(row):
        for cp in row_copies(row):
            cp.wait()

    s, h_e, t_e = _project_and_score(
        h_buf[...], t_buf[...], r_buf[...],
        hxf_buf[...], txf_buf[...], rxf_buf[...], l1_flag)
    score_ref[...] = s.astype(score_ref.dtype)
    hout_ref[...] = h_e.astype(hout_ref.dtype)
    tout_ref[...] = t_e.astype(tout_ref.dtype)


def transd_gather_project_and_score(h_ids, t_ids, r_ids,
                                    ent_w, rel_w, ent_xf_w, rel_xf_w, *, l1_flag):
    """Gather-fused path for large embeddings: ids -> SMEM (scalar prefetch),
    tables stay in HBM, per-row DMA gathers into VMEM scratch slabs per tile."""
    rows = h_ids.shape[0]
    feat = ent_w.shape[1]
    tb = _choose_tb(rows, feat, tb_cap=256)   # bound outstanding row-DMAs per step
    num_steps = pl.cdiv(rows, tb)
    rows_pad = num_steps * tb

    def pad_ids(ids):
        # Tiny int pad only: keeps tail gather indices valid (row 0); the tail
        # output rows are masked on store.
        ids = ids.astype(jnp.int32)
        return jnp.pad(ids, (0, rows_pad - rows))

    h_ids_p, t_ids_p, r_ids_p = pad_ids(h_ids), pad_ids(t_ids), pad_ids(r_ids)

    wide_out = pl.BlockSpec((tb, feat), lambda i, *_: (i, 0))
    hbm = pl.BlockSpec(memory_space=pl.ANY)

    # VMEM: 6 gather slabs + double-buffered outputs (+ headroom via _vmem_limit).
    vmem_need = (6 * tb * feat + 2 * (2 * tb * feat + tb)) * 4

    kernel = functools.partial(transd_gather_kernel, tb=tb, l1_flag=l1_flag)
    grid_spec = pltpu.PrefetchScalarGridSpec(
        num_scalar_prefetch=3,
        grid=(num_steps,),
        in_specs=[hbm, hbm, hbm, hbm],
        out_specs=(
            pl.BlockSpec((tb, 1), lambda i, *_: (i, 0)),
            wide_out,
            wide_out,
        ),
        scratch_shapes=[pltpu.VMEM((tb, feat), jnp.float32)] * 6
                       + [pltpu.SemaphoreType.DMA((6,))],
    )
    score, h_out, t_out = pl.pallas_call(
        kernel,
        grid_spec=grid_spec,
        out_shape=(
            jax.ShapeDtypeStruct((rows, 1), jnp.float32),
            jax.ShapeDtypeStruct((rows, feat), jnp.float32),
            jax.ShapeDtypeStruct((rows, feat), jnp.float32),
        ),
        compiler_params=pltpu.CompilerParams(
            dimension_semantics=("parallel",),
            vmem_limit_bytes=_vmem_limit(vmem_need),
        ),
    )(h_ids_p, t_ids_p, r_ids_p, ent_w, rel_w, ent_xf_w, rel_xf_w)
    return score[:, 0], h_out, t_out


# ----------------------------------------------------------------------------
# Parameter construction (mirrors TransDPretrainModelSameSize.__init__)
# ----------------------------------------------------------------------------
def xavier_uniform(key, shape):
    fan_out, fan_in = shape
    bound = (6.0 / (fan_in + fan_out)) ** 0.5
    return jax.random.uniform(key, shape, jnp.float32, minval=-bound, maxval=bound)


def init_transd_params(key, entity_total, relation_total, embedding_size):
    # TODO(synk): the real module loads pretrained TransE ent/rel weights from a
    # pickle file and zero-initializes the transfer tables; no file I/O allowed
    # here, so all four tables are synthesized deterministically (non-zero
    # transfer vectors keep the projection math numerically exercised).
    k1, k2, k3, k4 = jax.random.split(key, 4)
    ent_w = xavier_uniform(k1, (entity_total, embedding_size))
    rel_w = xavier_uniform(k2, (relation_total, embedding_size))
    ent_w = ent_w / jnp.maximum(jnp.linalg.norm(ent_w, axis=1, keepdims=True), 1e-12)
    rel_w = rel_w / jnp.maximum(jnp.linalg.norm(rel_w, axis=1, keepdims=True), 1e-12)
    ent_xf_w = 0.1 * xavier_uniform(k3, (entity_total, embedding_size))
    rel_xf_w = 0.1 * xavier_uniform(k4, (relation_total, embedding_size))
    return ent_w, rel_w, ent_xf_w, rel_xf_w


# ----------------------------------------------------------------------------
# Full forward: fused pos/neg batch, gather path chosen by embedding width
# ----------------------------------------------------------------------------
def transd_forward(params, pos_h, pos_t, pos_r, neg_h, neg_t, neg_r, *, l1_flag):
    ent_w, rel_w, ent_xf_w, rel_xf_w = params
    B = pos_h.shape[0]
    feat = ent_w.shape[1]

    # Fuse pos and neg branches into a single kernel launch.
    h_ids = jnp.concatenate([pos_h, neg_h]).astype(jnp.int32)
    t_ids = jnp.concatenate([pos_t, neg_t]).astype(jnp.int32)
    r_ids = jnp.concatenate([pos_r, neg_r]).astype(jnp.int32)

    if feat >= 512:
        # Rows are >= 2 KiB: fuse the embedding gather into the kernel and skip
        # the XLA-gather HBM round-trip entirely.
        score, h_out, t_out = transd_gather_project_and_score(
            h_ids, t_ids, r_ids, ent_w, rel_w, ent_xf_w, rel_xf_w, l1_flag=l1_flag)
    else:
        # Small rows: per-row DMA gathers are descriptor-bound; keep the XLA gather.
        h_e = jnp.take(ent_w, h_ids, axis=0)       # (2B, E)
        t_e = jnp.take(ent_w, t_ids, axis=0)
        r_e = jnp.take(rel_w, r_ids, axis=0)
        h_xf = jnp.take(ent_xf_w, h_ids, axis=0)
        t_xf = jnp.take(ent_xf_w, t_ids, axis=0)
        r_xf = jnp.take(rel_xf_w, r_ids, axis=0)
        score, h_out, t_out = transd_project_and_score(
            h_e, t_e, r_e, h_xf, t_xf, r_xf, l1_flag=l1_flag)

    pos, neg = score[:B], score[B:]
    pos_h_e, neg_h_e = h_out[:B], h_out[B:]
    pos_t_e, neg_t_e = t_out[:B], t_out[B:]
    return pos, neg, pos_h_e, pos_t_e, neg_h_e, neg_t_e


# ----------------------------------------------------------------------------
# Pure-JAX reference (mirrors the PyTorch forward) for validation
# ----------------------------------------------------------------------------
def _projection_transd_samesize(e, e_xf, r_xf):
    return e + jnp.sum(e * e_xf, axis=1, keepdims=True) * r_xf


def transd_forward_ref(params, pos_h, pos_t, pos_r, neg_h, neg_t, neg_r, *, l1_flag):
    ent_w, rel_w, ent_xf_w, rel_xf_w = params

    def branch(h_ids, t_ids, r_ids):
        h_e = jnp.take(ent_w, h_ids, axis=0)
        t_e = jnp.take(ent_w, t_ids, axis=0)
        r_e = jnp.take(rel_w, r_ids, axis=0)
        h_xf = jnp.take(ent_xf_w, h_ids, axis=0)
        t_xf = jnp.take(ent_xf_w, t_ids, axis=0)
        r_xf = jnp.take(rel_xf_w, r_ids, axis=0)
        h_p = _projection_transd_samesize(h_e, h_xf, r_xf)
        t_p = _projection_transd_samesize(t_e, t_xf, r_xf)
        d = h_p + r_e - t_p
        s = jnp.sum(jnp.abs(d), axis=1) if l1_flag else jnp.sum(d * d, axis=1)
        return s, h_p, t_p

    pos, ph, pt = branch(pos_h, pos_t, pos_r)
    neg, nh, nt = branch(neg_h, neg_t, neg_r)
    return pos, neg, ph, pt, nh, nt


# ----------------------------------------------------------------------------
# Self-test
# ----------------------------------------------------------------------------
def _run_case(entity_total, relation_total, embedding_size, batch_size, case_seed):
    key = jax.random.fold_in(jax.random.PRNGKey(0), case_seed)
    k_params, k_ph, k_pt, k_pr, k_nh, k_nt, k_nr = jax.random.split(key, 7)

    params = init_transd_params(k_params, entity_total, relation_total, embedding_size)
    pos_h = jax.random.randint(k_ph, (batch_size,), 0, entity_total, dtype=jnp.int32)
    pos_t = jax.random.randint(k_pt, (batch_size,), 0, entity_total, dtype=jnp.int32)
    pos_r = jax.random.randint(k_pr, (batch_size,), 0, relation_total, dtype=jnp.int32)
    neg_h = jax.random.randint(k_nh, (batch_size,), 0, entity_total, dtype=jnp.int32)
    neg_t = jax.random.randint(k_nt, (batch_size,), 0, entity_total, dtype=jnp.int32)
    neg_r = jax.random.randint(k_nr, (batch_size,), 0, relation_total, dtype=jnp.int32)

    for l1_flag in (True, False):   # exercise both the L1 and L2 score paths
        fwd = jax.jit(functools.partial(transd_forward, l1_flag=l1_flag))
        out = jax.block_until_ready(
            fwd(params, pos_h, pos_t, pos_r, neg_h, neg_t, neg_r))
        ref = transd_forward_ref(params, pos_h, pos_t, pos_r, neg_h, neg_t, neg_r,
                                 l1_flag=l1_flag)
        for got, want in zip(out, ref):
            assert got.shape == want.shape, (got.shape, want.shape)
            assert jnp.allclose(got, want, atol=1e-4, rtol=1e-4), \
                float(jnp.max(jnp.abs(got - want)))


if __name__ == "__main__":
    # Dense path (XLA gather + Pallas projection/score), E a multiple of 128.
    _run_case(entity_total=64, relation_total=16, embedding_size=128,
              batch_size=16, case_seed=0)
    # Dense path with E % 128 != 0 and a ragged batch (rows % tile != 0).
    _run_case(entity_total=50, relation_total=11, embedding_size=100,
              batch_size=13, case_seed=1)
    # Gather-fused path (scalar-prefetched ids + in-kernel per-row DMAs), E >= 512.
    _run_case(entity_total=40, relation_total=8, embedding_size=512,
              batch_size=10, case_seed=2)
    print("KERNEL_OK")
</pallas_src>

<mosaic_0001>
module attributes {stable_mosaic.version = 11 : i64} {
  func.func @transd_dense_kernel(%arg0: i32, %arg1: memref<32x128xf32, #tpu.memory_space<vmem>>, %arg2: memref<32x128xf32, #tpu.memory_space<vmem>>, %arg3: memref<32x128xf32, #tpu.memory_space<vmem>>, %arg4: memref<32x128xf32, #tpu.memory_space<vmem>>, %arg5: memref<32x128xf32, #tpu.memory_space<vmem>>, %arg6: memref<32x128xf32, #tpu.memory_space<vmem>>, %arg7: memref<32x1xf32, #tpu.memory_space<vmem>>, %arg8: memref<32x128xf32, #tpu.memory_space<vmem>>, %arg9: memref<32x128xf32, #tpu.memory_space<vmem>>) attributes {dimension_semantics = [#tpu.dimension_semantics<parallel>], iteration_bounds = array<i64: 1>, scalar_prefetch = 0 : i64, scratch_operands = 0 : i64, tpu.core_type = #tpu.core_type<tc>, window_params = [{transform_indices = @transform_0, window_bounds = array<i64: 32, 128>}, {transform_indices = @transform_1, window_bounds = array<i64: 32, 128>}, {transform_indices = @transform_2, window_bounds = array<i64: 32, 128>}, {transform_indices = @transform_3, window_bounds = array<i64: 32, 128>}, {transform_indices = @transform_4, window_bounds = array<i64: 32, 128>}, {transform_indices = @transform_5, window_bounds = array<i64: 32, 128>}, {transform_indices = @transform_6, window_bounds = array<i64: 32, 1>}, {transform_indices = @transform_7, window_bounds = array<i64: 32, 128>}, {transform_indices = @transform_8, window_bounds = array<i64: 32, 128>}]} {
    %c0 = arith.constant 0 : index
    %c0_0 = arith.constant 0 : index
    %0 = vector.load %arg1[%c0, %c0_0] : memref<32x128xf32, #tpu.memory_space<vmem>>, vector<32x128xf32>
    %c0_1 = arith.constant 0 : index
    %c0_2 = arith.constant 0 : index
    %1 = vector.load %arg2[%c0_1, %c0_2] : memref<32x128xf32, #tpu.memory_space<vmem>>, vector<32x128xf32>
    %c0_3 = arith.constant 0 : index
    %c0_4 = arith.constant 0 : index
    %2 = vector.load %arg3[%c0_3, %c0_4] : memref<32x128xf32, #tpu.memory_space<vmem>>, vector<32x128xf32>
    %c0_5 = arith.constant 0 : index
    %c0_6 = arith.constant 0 : index
    %3 = vector.load %arg4[%c0_5, %c0_6] : memref<32x128xf32, #tpu.memory_space<vmem>>, vector<32x128xf32>
    %c0_7 = arith.constant 0 : index
    %c0_8 = arith.constant 0 : index
    %4 = vector.load %arg5[%c0_7, %c0_8] : memref<32x128xf32, #tpu.memory_space<vmem>>, vector<32x128xf32>
    %c0_9 = arith.constant 0 : index
    %c0_10 = arith.constant 0 : index
    %5 = vector.load %arg6[%c0_9, %c0_10] : memref<32x128xf32, #tpu.memory_space<vmem>>, vector<32x128xf32>
    %6 = arith.mulf %0, %3 : vector<32x128xf32>
    %cst = arith.constant dense<0.000000e+00> : vector<32xf32>
    %7 = vector.multi_reduction <add>, %6, %cst [1] : vector<32x128xf32> to vector<32xf32>
    %8 = vector.shape_cast %7 : vector<32xf32> to vector<32x1xf32>
    %9 = arith.mulf %1, %4 : vector<32x128xf32>
    %cst_11 = arith.constant dense<0.000000e+00> : vector<32xf32>
    %10 = vector.multi_reduction <add>, %9, %cst_11 [1] : vector<32x128xf32> to vector<32xf32>
    %11 = vector.shape_cast %10 : vector<32xf32> to vector<32x1xf32>
    %12 = vector.broadcast %8 : vector<32x1xf32> to vector<32x128xf32>
    %13 = arith.mulf %12, %5 : vector<32x128xf32>
    %14 = arith.addf %0, %13 : vector<32x128xf32>
    %15 = vector.broadcast %11 : vector<32x1xf32> to vector<32x128xf32>
    %16 = arith.mulf %15, %5 : vector<32x128xf32>
    %17 = arith.addf %1, %16 : vector<32x128xf32>
    %18 = arith.addf %14, %2 : vector<32x128xf32>
    %19 = arith.subf %18, %17 : vector<32x128xf32>
    %20 = math.absf %19 : vector<32x128xf32>
    %cst_12 = arith.constant dense<0.000000e+00> : vector<32xf32>
    %21 = vector.multi_reduction <add>, %20, %cst_12 [1] : vector<32x128xf32> to vector<32xf32>
    %22 = vector.shape_cast %21 : vector<32xf32> to vector<32x1xf32>
    %c0_13 = arith.constant 0 : index
    %c0_14 = arith.constant 0 : index
    %23 = vector.load %arg7[%c0_13, %c0_14] : memref<32x1xf32, #tpu.memory_space<vmem>>, vector<32x1xf32>
    tpu.vector_store %arg7[%c0_13, %c0_14], %22 {strides = array<i32>} : memref<32x1xf32, #tpu.memory_space<vmem>>, vector<32x1xf32>,
    %c0_15 = arith.constant 0 : index
    %c0_16 = arith.constant 0 : index
    %24 = vector.load %arg8[%c0_15, %c0_16] : memref<32x128xf32, #tpu.memory_space<vmem>>, vector<32x128xf32>
    tpu.vector_store %arg8[%c0_15, %c0_16], %14 {strides = array<i32>} : memref<32x128xf32, #tpu.memory_space<vmem>>, vector<32x128xf32>,
    %c0_17 = arith.constant 0 : index
    %c0_18 = arith.constant 0 : index
    %25 = vector.load %arg9[%c0_17, %c0_18] : memref<32x128xf32, #tpu.memory_space<vmem>>, vector<32x128xf32>
    tpu.vector_store %arg9[%c0_17, %c0_18], %17 {strides = array<i32>} : memref<32x128xf32, #tpu.memory_space<vmem>>, vector<32x128xf32>,
    return
  }
  func.func @transform_0(%arg0: i32) -> (i32, i32) {
    %c0_i32 = arith.constant 0 : i32
    %c0_i32_0 = arith.constant 0 : i32
    return %arg0, %c0_i32 : i32, i32
  }
  func.func @transform_1(%arg0: i32) -> (i32, i32) {
    %c0_i32 = arith.constant 0 : i32
    %c0_i32_0 = arith.constant 0 : i32
    return %arg0, %c0_i32 : i32, i32
  }
  func.func @transform_2(%arg0: i32) -> (i32, i32) {
    %c0_i32 = arith.constant 0 : i32
    %c0_i32_0 = arith.constant 0 : i32
    return %arg0, %c0_i32 : i32, i32
  }
  func.func @transform_3(%arg0: i32) -> (i32, i32) {
    %c0_i32 = arith.constant 0 : i32
    %c0_i32_0 = arith.constant 0 : i32
    return %arg0, %c0_i32 : i32, i32
  }
  func.func @transform_4(%arg0: i32) -> (i32, i32) {
    %c0_i32 = arith.constant 0 : i32
    %c0_i32_0 = arith.constant 0 : i32
    return %arg0, %c0_i32 : i32, i32
  }
  func.func @transform_5(%arg0: i32) -> (i32, i32) {
    %c0_i32 = arith.constant 0 : i32
    %c0_i32_0 = arith.constant 0 : i32
    return %arg0, %c0_i32 : i32, i32
  }
  func.func @transform_6(%arg0: i32) -> (i32, i32) {
    %c0_i32 = arith.constant 0 : i32
    %c0_i32_0 = arith.constant 0 : i32
    return %arg0, %c0_i32 : i32, i32
  }
  func.func @transform_7(%arg0: i32) -> (i32, i32) {
    %c0_i32 = arith.constant 0 : i32
    %c0_i32_0 = arith.constant 0 : i32
    return %arg0, %c0_i32 : i32, i32
  }
  func.func @transform_8(%arg0: i32) -> (i32, i32) {
    %c0_i32 = arith.constant 0 : i32
    %c0_i32_0 = arith.constant 0 : i32
    return %arg0, %c0_i32 : i32, i32
  }
}

</mosaic_0001>

<bundles_post_ra>
// kernel: transd_forward.1
= control target key start
LH: loop header
LB: loop body
LE: loop exit
PB: predicated region body
PF: predicated region fallthrough
CT: control target
= control target key end

     0   :  { %vm110_vm0 = vcmask 7168   ;;  %s288_s0 = inlined_call_operand.vmem [shape: f32[32,128], index: 0, kind: input, shape index: {}]   ;;  %s289_s3 = inlined_call_operand.vmem [shape: f32[32,128], index: 3, kind: input, shape index: {}]   ;;  %s290_s1 = inlined_call_operand.vmem [shape: f32[32,128], index: 1, kind: input, shape index: {}]   ;;  %s291_s4 = inlined_call_operand.vmem [shape: f32[32,128], index: 4, kind: input, shape index: {}]   ;;  %s292_s5 = inlined_call_operand.vmem [shape: f32[32,128], index: 5, kind: input, shape index: {}]   ;;  %s293_s7 = inlined_call_operand.vmem [shape: f32[32,128], index: 7, kind: output, shape index: {1}]   ;;  %s294_s2 = inlined_call_operand.vmem [shape: f32[32,128], index: 2, kind: input, shape index: {}]   ;;  %s295_s8 = inlined_call_operand.vmem [shape: f32[32,128], index: 8, kind: output, shape index: {2}]   ;;  %s296_s6 = inlined_call_operand.vmem [shape: f32[32,1], index: 6, kind: output, shape index: {0}]  }
   0x1   :  { %v28_v0 = vld [vmem:[%s288_s0 + $0x10] sm:$0xff]  ;;  %v26_v2 = vld [vmem:[%s288_s0] sm:$0xff]  ;;  %v29_v5 = vld [vmem:[%s288_s0 + $0x18] sm:$0xff] }
   0x2   :  { %v40_v1 = vld [vmem:[%s289_s3 + $0x10] sm:$0xff]  ;;  %v38_v4 = vld [vmem:[%s289_s3] sm:$0xff]  ;;  %v41_v6 = vld [vmem:[%s289_s3 + $0x18] sm:$0xff] }
   0x3   :  { %v52_v3 = vmul.f32 %v40_v1, %v28_v0  ;;  %v50_v7 = vmul.f32 %v38_v4, %v26_v2  ;;  %v27_v8 = vld [vmem:[%s288_s0 + $0x8] sm:$0xff]  ;;  %v53_v10 = vmul.f32 %v41_v6, %v29_v5  ;;  %v30_v14 = vld [vmem:[%s290_s1] sm:$0xff]  ;;  %v33_v18 = vld [vmem:[%s290_s1 + $0x18] sm:$0xff] }
   0x4   :  { %v39_v9 = vld [vmem:[%s289_s3 + $0x8] sm:$0xff]  ;;  %v42_v15 = vld [vmem:[%s291_s4] sm:$0xff]  ;;  %v45_v19 = vld [vmem:[%s291_s4 + $0x18] sm:$0xff] }
   0x5   :  { %58 = vadd.xlane.f32.xlu1 %v52_v3  ;;  %54 = vadd.xlane.f32.xlu0 %v50_v7  ;;  %v51_v11 = vmul.f32 %v39_v9, %v27_v8  ;;  %v31_v12 = vld [vmem:[%s290_s1 + $0x8] sm:$0xff]  ;;  %v62_v17 = vmul.f32 %v42_v15, %v30_v14  ;;  %v32_v20 = vld [vmem:[%s290_s1 + $0x10] sm:$0xff]  ;;  %v65_v22 = vmul.f32 %v45_v19, %v33_v18  ;;  %v46_v25 = vld [vmem:[%s292_s5] sm:$0xff] }
   0x6   :  { %v43_v13 = vld [vmem:[%s291_s4 + $0x8] sm:$0xff]  ;;  %v44_v21 = vld [vmem:[%s291_s4 + $0x10] sm:$0xff]  ;;  %v49_v30 = vld [vmem:[%s292_s5 + $0x18] sm:$0xff] }
   0x7   :  { %v63_v16 = vmul.f32 %v43_v13, %v31_v12  ;;  %v64_v23 = vmul.f32 %v44_v21, %v32_v20  ;;  %v48_v24 = vld [vmem:[%s292_s5 + $0x10] sm:$0xff]  ;;  %v47_v32 = vld [vmem:[%s292_s5 + $0x8] sm:$0xff]  ;;  %v34_v44 = vld [vmem:[%s294_s2] sm:$0xff] }
   0x8   :  { %v35_v41 = vld [vmem:[%s294_s2 + $0x8] sm:$0xff]  ;;  %v37_v51 = vld [vmem:[%s294_s2 + $0x18] sm:$0xff]  ;;  %v36_v55 = vld [vmem:[%s294_s2 + $0x10] sm:$0xff] }
   0x9   :  { %60 = vadd.xlane.f32.xlu1 %v53_v10  ;;  %56 = vadd.xlane.f32.xlu0 %v51_v11 }
   0xd   :  { %68 = vadd.xlane.f32.xlu1 %v63_v16  ;;  %66 = vadd.xlane.f32.xlu0 %v62_v17 }
  0x11   :  { %72 = vadd.xlane.f32.xlu1 %v65_v22  ;;  %70 = vadd.xlane.f32.xlu0 %v64_v23 }
  0x8e   :  { %v59_v26 = vpop.xlane.xlu1 %58  ;;  %v55_v28 = vpop.xlane.xlu0 %54 }
  0x8f   :  { %v76_v27 = vmul.f32 %v59_v26, %v48_v24  ;;  %v74_v29 = vmul.f32 %v55_v28, %v46_v25 }
  0x91   :  { %v80_v31 = vadd.f32 %v76_v27, %v28_v0  ;;  %v78_v33 = vadd.f32 %v74_v29, %v26_v2 }
  0x92   :  { %v61_v34 = vpop.xlane.xlu1 %60  ;;  %v57_v36 = vpop.xlane.xlu0 %56 }
  0x93   :  { %117 = vst [vmem:[%s293_s7 + $0x10] sm:$0xff] %v80_v31  ;;  %v77_v35 = vmul.f32 %v61_v34, %v49_v30  ;;  %115 = vst [vmem:[%s293_s7] sm:$0xff] %v78_v33  ;;  %v75_v37 = vmul.f32 %v57_v36, %v47_v32  ;;  %v90_v50 = vadd.f32 %v78_v33, %v34_v44 }
  0x94   :  { %v92_v63 = vadd.f32 %v80_v31, %v36_v55 }
  0x95   :  { %v81_v38 = vadd.f32 %v77_v35, %v29_v5  ;;  %v79_v39 = vadd.f32 %v75_v37, %v27_v8 }
  0x96   :  { %v69_v40 = vpop.xlane.xlu1 %68  ;;  %v67_v43 = vpop.xlane.xlu0 %66 }
  0x97   :  { %118 = vst [vmem:[%s293_s7 + $0x18] sm:$0xff] %v81_v38  ;;  %v83_v42 = vmul.f32 %v69_v40, %v47_v32  ;;  %116 = vst [vmem:[%s293_s7 + $0x8] sm:$0xff] %v79_v39  ;;  %v82_v45 = vmul.f32 %v67_v43, %v46_v25  ;;  %v91_v47 = vadd.f32 %v79_v39, %v35_v41 }
  0x98   :  { %v93_v60 = vadd.f32 %v81_v38, %v37_v51 }
  0x99   :  { %v87_v46 = vadd.f32 %v83_v42, %v31_v12  ;;  %v86_v48 = vadd.f32 %v82_v45, %v30_v14 }
  0x9a   :  { %v73_v49 = vpop.xlane.xlu1 %72  ;;  %v71_v53 = vpop.xlane.xlu0 %70 }
  0x9b   :  { %120 = vst [vmem:[%s295_s8 + $0x8] sm:$0xff] %v87_v46  ;;  %v85_v52 = vmul.f32 %v73_v49, %v49_v30  ;;  %v95_v54 = vsub.f32 %v91_v47, %v87_v46  ;;  %119 = vst [vmem:[%s295_s8] sm:$0xff] %v86_v48  ;;  %v84_v56 = vmul.f32 %v71_v53, %v48_v24 }
  0x9c   :  { %v94_v57 = vsub.f32 %v90_v50, %v86_v48 }
  0x9d   :  { %v89_v58 = vadd.f32 %v85_v52, %v33_v18  ;;  %v99_v59 = vand.u32 2147483647, %v95_v54  ;;  %v88_v61 = vadd.f32 %v84_v56, %v32_v20 }
  0x9e   :  { %v98_v62 = vand.u32 2147483647, %v94_v57 }
  0x9f   :  { %122 = vst [vmem:[%s295_s8 + $0x18] sm:$0xff] %v89_v58  ;;  %104 = vadd.xlane.f32.xlu1 %v99_v59  ;;  %v97_v0 = vsub.f32 %v93_v60, %v89_v58  ;;  %121 = vst [vmem:[%s295_s8 + $0x10] sm:$0xff] %v88_v61  ;;  %v96_v1 = vsub.f32 %v92_v63, %v88_v61 }
  0xa0   :  { %102 = vadd.xlane.f32.xlu0 %v98_v62 }
  0xa1   :  { %v101_v2 = vand.u32 2147483647, %v97_v0  ;;  %v100_v3 = vand.u32 2147483647, %v96_v1 }
  0xa3   :  { %108 = vadd.xlane.f32.xlu1 %v101_v2 }
  0xa4   :  { %106 = vadd.xlane.f32.xlu0 %v100_v3 }
 0x128   :  { %v105_v4 = vpop.xlane.xlu1 %104 }
 0x129   :  { %112 = vst.msk [vmem:[%s296_s6 + $0x8] sm:$0xff] %vm110_vm0, %v105_v4  ;;  %v103_v5 = vpop.xlane.xlu0 %102 }
 0x12a   :  { %111 = vst.msk [vmem:[%s296_s6] sm:$0xff] %vm110_vm0, %v103_v5 }
 0x12c   :  { %v109_v6 = vpop.xlane.xlu1 %108 }
 0x12d   :  { %114 = vst.msk [vmem:[%s296_s6 + $0x18] sm:$0xff] %vm110_vm0, %v109_v6  ;;  %v107_v7 = vpop.xlane.xlu0 %106 }
 0x12e   :  { %113 = vst.msk [vmem:[%s296_s6 + $0x10] sm:$0xff] %vm110_vm0, %v107_v7 }

</bundles_post_ra>
